<compile_context>
chip_gen: v7x
topology: tpu7x:2x2x1
jax: 0.10.0
libtpu: 0.0.40
codegen_flags: <defaults>
</compile_context>

<pallas_src>
import functools

import numpy as np

import jax
import jax.numpy as jnp
from jax import lax
from jax.experimental import pallas as pl
from jax.experimental.pallas import tpu as pltpu

EPS = 1e-5  # PyTorch LayerNorm default


def _round_up(v, m):
    return ((v + m - 1) // m) * m


def _vmem_limits():
    """Per-generation VMEM sizing (v5e/v6e: 128 MiB, v7x: 64 MiB physical)."""
    phys = 64 * 1024 * 1024
    try:
        phys = int(getattr(pltpu.get_tpu_info(), "vmem_capacity_bytes", phys))
    except Exception:
        pass
    limit = max(min(phys * 3 // 4, 96 * 1024 * 1024), 32 * 1024 * 1024)
    budget = max(limit - 8 * 1024 * 1024, 16 * 1024 * 1024)
    return limit, budget


_VMEM_LIMIT, _VMEM_BUDGET = _vmem_limits()


# ----------------------------------------------------------------------------
# Kernel: in-VMEM im2col (grouped taps) -> matmul -> bias -> LayerNorm
#   xs_ref : (1, Hq, Wq, s*s*Cin)  bf16  space-to-depth image (resident per b)
#   wg_ref : (QH*QW, s*s*Cin, E)   bf16  grouped conv weights (resident)
#   par_ref: (3, E)                f32   [bias, gamma, beta]
#   o_ref  : (1, TH*Wo_t, E)       out dtype
# ----------------------------------------------------------------------------
def _patch_embed_kernel(xs_ref, wg_ref, par_ref, o_ref, *, th, wo_t, qh_n, qw_n):
    i = pl.program_id(1)                      # row-tile index within the image
    tokens = th * wo_t
    p2c = wg_ref.shape[1]
    e = o_ref.shape[2]

    acc = jnp.zeros((tokens, e), jnp.float32)
    # Conv as QH*QW grouped matmuls: each group g=(qh,qw) contracts over all
    # stride-phases and input channels at once (K = s*s*Cin on the MXU).
    for qh in range(qh_n):
        for qw in range(qw_n):
            g = qh * qw_n + qw
            lhs = xs_ref[0, pl.ds(i * th + qh, th), pl.ds(qw, wo_t), :]
            lhs = lhs.reshape(tokens, p2c)          # wo_t % 8 == 0 -> trivial
            acc = acc + jnp.dot(lhs, wg_ref[g],
                                preferred_element_type=jnp.float32)

    bias = par_ref[0:1, :]
    gamma = par_ref[1:2, :]
    beta = par_ref[2:3, :]

    x = acc + bias                                  # conv bias before LN
    mean = jnp.mean(x, axis=-1, keepdims=True)
    d = x - mean
    var = jnp.mean(d * d, axis=-1, keepdims=True)   # biased, like torch
    y = d * lax.rsqrt(var + EPS) * gamma + beta
    o_ref[0] = y.astype(o_ref.dtype)


# ----------------------------------------------------------------------------
# Row-tile chooser (accounts for LN f32 temporaries and resident operands)
# ----------------------------------------------------------------------------
def _choose_row_tile(B, Ho, Wo_t, E, P2C, G, qh_max, out_bytes, budget):
    ep = _round_up(E, 128)
    p2cp = _round_up(P2C, 128)
    hq_est = Ho + qh_max + 8
    wq_pad = _round_up(Wo_t + qh_max + 1, 8)
    resident = (2 * hq_est * wq_pad * p2cp * 2          # image block, 2 buffers
                + 2 * G * _round_up(P2C, 8) * ep * 2    # grouped weights
                + 8 * ep * 4)                           # params
    per_row = Wo_t * (2 * ep * out_bytes                # out block, 2 buffers
                      + 4 * ep * 4                      # acc + LN f32 temps
                      + 2 * p2cp * 2)                   # lhs tap slices (bf16)
    avail = max(budget - resident, per_row)
    th = max(1, min(Ho, int(avail // per_row)))
    n_ht = pl.cdiv(Ho, th)
    # Keep an even total step count so the v7x megacore splits evenly.
    if (B * n_ht) % 2 == 1 and n_ht < Ho:
        n_ht += 1
    th = pl.cdiv(Ho, n_ht)
    return th, n_ht


# ----------------------------------------------------------------------------
# Forward wrapper
# ----------------------------------------------------------------------------
@functools.partial(jax.jit, static_argnames=("stride", "pad", "out_dtype"))
def _forward_impl(x_nchw, w_hwio, bias, gamma, beta, *, stride, pad, out_dtype):
    B, Cin, H, W = x_nchw.shape
    KH, KW, _, E = w_hwio.shape
    s = stride
    Ho = (H + 2 * pad - KH) // s + 1
    Wo = (W + 2 * pad - KW) // s + 1
    QH = (KH - 1) // s + 1                 # H-quotient taps per output row
    QW = (KW - 1) // s + 1
    G = QH * QW
    P2C = s * s * Cin                      # phases x channels (matmul K)
    Wo_t = _round_up(Wo, 8)                # W-token width per tile (sublane-aligned)

    out_bytes = np.dtype(out_dtype).itemsize
    TH, n_ht = _choose_row_tile(B, Ho, Wo_t, E, P2C, G, QH - 1, out_bytes,
                                _VMEM_BUDGET)
    Hq = n_ht * TH + (QH - 1)
    Wq = Wo_t + (QW - 1)

    # --- single input-sized pass: NCHW -> NHWC, pad, bf16, space-to-depth ----
    xh = jnp.transpose(x_nchw, (0, 2, 3, 1)).astype(jnp.bfloat16)
    need_h, need_w = s * Hq, s * Wq
    xp = jnp.pad(xh, ((0, 0),
                      (pad, max(need_h - pad - H, 0)),
                      (pad, max(need_w - pad - W, 0)),
                      (0, 0)))
    xp = xp[:, :need_h, :need_w, :]
    # xs[b, i, j, (rh*s+rw)*Cin + c] = xp[b, i*s+rh, j*s+rw, c]
    xs = xp.reshape(B, Hq, s, Wq, s, Cin).transpose(0, 1, 3, 2, 4, 5)
    xs = xs.reshape(B, Hq, Wq, P2C)

    # --- grouped conv weights: Wg[qh*QW+qw, (rh*s+rw)*Cin + c, e] -------------
    wg = jnp.pad(w_hwio, ((0, QH * s - KH), (0, QW * s - KW), (0, 0), (0, 0)))
    wg = wg.reshape(QH, s, QW, s, Cin, E).transpose(0, 2, 1, 3, 4, 5)
    wg = wg.reshape(G, P2C, E).astype(jnp.bfloat16)

    par = jnp.stack([bias, gamma, beta]).astype(jnp.float32)      # (3, E)

    kernel = functools.partial(_patch_embed_kernel,
                               th=TH, wo_t=Wo_t, qh_n=QH, qw_n=QW)
    tokens_pad = n_ht * TH * Wo_t
    out = pl.pallas_call(
        kernel,
        out_shape=jax.ShapeDtypeStruct((B, tokens_pad, E), out_dtype),
        grid_spec=pltpu.PrefetchScalarGridSpec(
            num_scalar_prefetch=0,
            grid=(B, n_ht),
            in_specs=[
                # whole space-to-depth image for batch b, resident across i
                pl.BlockSpec((1, Hq, Wq, P2C), lambda b, i: (b, 0, 0, 0)),
                pl.BlockSpec((G, P2C, E), lambda b, i: (0, 0, 0)),
                pl.BlockSpec((3, E), lambda b, i: (0, 0)),
            ],
            out_specs=pl.BlockSpec((1, TH * Wo_t, E), lambda b, i: (b, i, 0)),
        ),
        compiler_params=pltpu.CompilerParams(
            dimension_semantics=("parallel", "parallel"),
            vmem_limit_bytes=_VMEM_LIMIT,
        ),
    )(xs, wg, par)

    # Drop ragged tail rows/cols (output-sized copy, only when shapes are ragged).
    if n_ht * TH != Ho or Wo_t != Wo:
        out = out.reshape(B, n_ht * TH, Wo_t, E)[:, :Ho, :Wo, :]
    return out.reshape(B, Ho * Wo, E)


def overlap_patch_embed(x_nchw, w_hwio, bias, gamma, beta, *, stride,
                        pad=None, out_dtype=None):
    """Matches OverlapPatchEmbed.forward: returns (tokens (B, N, E), H', W')."""
    KH, KW = w_hwio.shape[0], w_hwio.shape[1]
    if pad is None:
        pad = KH // 2                      # padding = patch_size // 2, per the module
    if out_dtype is None:
        out_dtype = x_nchw.dtype           # keep module dtype semantics by default
    out_dtype = np.dtype(out_dtype)
    H, W = x_nchw.shape[2], x_nchw.shape[3]
    Ho = (H + 2 * pad - KH) // stride + 1
    Wo = (W + 2 * pad - KW) // stride + 1
    tokens = _forward_impl(x_nchw, w_hwio, bias, gamma, beta,
                           stride=stride, pad=pad, out_dtype=out_dtype)
    return tokens, Ho, Wo


# ----------------------------------------------------------------------------
# Pure-JAX reference (independent conv path, same bf16 operand precision)
# ----------------------------------------------------------------------------
def ref_forward(x_nchw, w_hwio, bias, gamma, beta, *, stride, pad):
    y = lax.conv_general_dilated(
        x_nchw.astype(jnp.bfloat16), w_hwio.astype(jnp.bfloat16),
        window_strides=(stride, stride), padding=((pad, pad), (pad, pad)),
        dimension_numbers=("NCHW", "HWIO", "NCHW"),
        preferred_element_type=jnp.float32,
    ) + bias[None, :, None, None]
    B, E, Ho, Wo = y.shape
    tok = y.reshape(B, E, Ho * Wo).transpose(0, 2, 1)            # (B, N, E)
    mu = tok.mean(-1, keepdims=True)
    var = ((tok - mu) ** 2).mean(-1, keepdims=True)              # biased
    tok = (tok - mu) * lax.rsqrt(var + EPS) * gamma + beta
    return tok, Ho, Wo


# ----------------------------------------------------------------------------
# Demo / self-check
# ----------------------------------------------------------------------------
if __name__ == "__main__":
    def run_case(key, B, Cin, H, W, E, patch, stride, out_dtype, tol):
        kx, kw, kb, kg, kbt = jax.random.split(key, 5)
        x = jax.random.normal(kx, (B, Cin, H, W), jnp.float32)
        fan_out = patch * patch * E
        w = jax.random.normal(kw, (patch, patch, Cin, E), jnp.float32) * (2.0 / fan_out) ** 0.5
        bias = 0.1 * jax.random.normal(kb, (E,), jnp.float32)
        gamma = 1.0 + 0.1 * jax.random.normal(kg, (E,), jnp.float32)
        beta = 0.1 * jax.random.normal(kbt, (E,), jnp.float32)

        out, Ho, Wo = overlap_patch_embed(x, w, bias, gamma, beta,
                                          stride=stride, out_dtype=out_dtype)
        out = jax.block_until_ready(out)

        ref, rHo, rWo = ref_forward(x, w, bias, gamma, beta, stride=stride, pad=patch // 2)
        assert (Ho, Wo) == (rHo, rWo), ((Ho, Wo), (rHo, rWo))
        assert out.shape == (B, Ho * Wo, E), out.shape
        err = float(jnp.max(jnp.abs(out.astype(jnp.float32) - ref)))
        assert err < tol, err

    key = jax.random.PRNGKey(0)
    k1, k2 = jax.random.split(key)
    # UNext-style patch embed: k=3, s=2 (small E, bf16 writeback, grouped 2x2 taps)
    run_case(k1, B=2, Cin=4, H=16, W=16, E=32, patch=3, stride=2,
             out_dtype=jnp.bfloat16, tol=5e-2)
    # Spec defaults (small image): k=8, s=4 (even kernel, ragged Wo, f32 output)
    run_case(k2, B=2, Cin=3, H=16, W=16, E=128, patch=8, stride=4,
             out_dtype=jnp.float32, tol=2e-3)

    print("KERNEL_OK")
</pallas_src>

<mosaic_0001>
module attributes {stable_mosaic.version = 11 : i64} {
  func.func @_patch_embed_kernel(%arg0: i32, %arg1: i32, %arg2: memref<1x9x9x16xbf16, #tpu.memory_space<vmem>>, %arg3: memref<4x16x32xbf16, #tpu.memory_space<vmem>>, %arg4: memref<3x32xf32, #tpu.memory_space<vmem>>, %arg5: memref<1x64x32xbf16, #tpu.memory_space<vmem>>) attributes {dimension_semantics = [#tpu.dimension_semantics<parallel>, #tpu.dimension_semantics<parallel>], iteration_bounds = array<i64: 2, 1>, scalar_prefetch = 0 : i64, scratch_operands = 0 : i64, tpu.core_type = #tpu.core_type<tc>, window_params = [{transform_indices = @transform_0, window_bounds = array<i64: 1, 9, 9, 16>}, {pipeline_mode = #tpu.pipeline_mode<synchronous>, transform_indices = @transform_1, window_bounds = array<i64: 4, 16, 32>}, {pipeline_mode = #tpu.pipeline_mode<synchronous>, transform_indices = @transform_2, window_bounds = array<i64: 3, 32>}, {transform_indices = @transform_3, window_bounds = array<i64: 1, 64, 32>}]} {
    %cst = arith.constant 0.000000e+00 : f32
    %0 = vector.broadcast %cst : f32 to vector<64x32xf32>
    %c8_i32 = arith.constant 8 : i32
    %1 = arith.muli %arg1, %c8_i32 : i32
    %c0_i32 = arith.constant 0 : i32
    %2 = arith.addi %1, %c0_i32 : i32
    %c0 = arith.constant 0 : index
    %3 = arith.index_cast %2 : i32 to index
    %c0_0 = arith.constant 0 : index
    %c0_1 = arith.constant 0 : index
    %4 = vector.load %arg2[%c0, %3, %c0_0, %c0_1] : memref<1x9x9x16xbf16, #tpu.memory_space<vmem>>, vector<1x8x8x16xbf16>
    %5 = vector.shape_cast %4 : vector<1x8x8x16xbf16> to vector<8x8x16xbf16>
    %6 = vector.shape_cast %5 : vector<8x8x16xbf16> to vector<64x16xbf16>
    %c0_2 = arith.constant 0 : index
    %c0_3 = arith.constant 0 : index
    %c0_4 = arith.constant 0 : index
    %7 = vector.load %arg3[%c0_2, %c0_3, %c0_4] : memref<4x16x32xbf16, #tpu.memory_space<vmem>>, vector<1x16x32xbf16>
    %8 = vector.shape_cast %7 : vector<1x16x32xbf16> to vector<16x32xbf16>
    %cst_5 = arith.constant dense<0.000000e+00> : vector<64x32xf32>
    %9 = tpu.matmul %6, %8, %cst_5 {dimension_numbers = #tpu.dot_dimension_numbers<[1], [0], [0], [1], [0, 0, 1, 1], [], []>} : vector<64x16xbf16>, vector<16x32xbf16>, vector<64x32xf32> -> vector<64x32xf32>
    %10 = arith.addf %0, %9 : vector<64x32xf32>
    %c8_i32_6 = arith.constant 8 : i32
    %11 = arith.muli %arg1, %c8_i32_6 : i32
    %c0_i32_7 = arith.constant 0 : i32
    %12 = arith.addi %11, %c0_i32_7 : i32
    %c0_8 = arith.constant 0 : index
    %13 = arith.index_cast %12 : i32 to index
    %c1 = arith.constant 1 : index
    %c0_9 = arith.constant 0 : index
    %14 = vector.load %arg2[%c0_8, %13, %c1, %c0_9] : memref<1x9x9x16xbf16, #tpu.memory_space<vmem>>, vector<1x8x8x16xbf16>
    %15 = vector.shape_cast %14 : vector<1x8x8x16xbf16> to vector<8x8x16xbf16>
    %16 = vector.shape_cast %15 : vector<8x8x16xbf16> to vector<64x16xbf16>
    %c1_10 = arith.constant 1 : index
    %c0_11 = arith.constant 0 : index
    %c0_12 = arith.constant 0 : index
    %17 = vector.load %arg3[%c1_10, %c0_11, %c0_12] : memref<4x16x32xbf16, #tpu.memory_space<vmem>>, vector<1x16x32xbf16>
    %18 = vector.shape_cast %17 : vector<1x16x32xbf16> to vector<16x32xbf16>
    %cst_13 = arith.constant dense<0.000000e+00> : vector<64x32xf32>
    %19 = tpu.matmul %16, %18, %cst_13 {dimension_numbers = #tpu.dot_dimension_numbers<[1], [0], [0], [1], [0, 0, 1, 1], [], []>} : vector<64x16xbf16>, vector<16x32xbf16>, vector<64x32xf32> -> vector<64x32xf32>
    %20 = arith.addf %10, %19 : vector<64x32xf32>
    %c8_i32_14 = arith.constant 8 : i32
    %21 = arith.muli %arg1, %c8_i32_14 : i32
    %c1_i32 = arith.constant 1 : i32
    %22 = arith.addi %21, %c1_i32 : i32
    %c0_15 = arith.constant 0 : index
    %23 = arith.index_cast %22 : i32 to index
    %c0_16 = arith.constant 0 : index
    %c0_17 = arith.constant 0 : index
    %24 = vector.load %arg2[%c0_15, %23, %c0_16, %c0_17] : memref<1x9x9x16xbf16, #tpu.memory_space<vmem>>, vector<1x8x8x16xbf16>
    %25 = vector.shape_cast %24 : vector<1x8x8x16xbf16> to vector<8x8x16xbf16>
    %26 = vector.shape_cast %25 : vector<8x8x16xbf16> to vector<64x16xbf16>
    %c2 = arith.constant 2 : index
    %c0_18 = arith.constant 0 : index
    %c0_19 = arith.constant 0 : index
    %27 = vector.load %arg3[%c2, %c0_18, %c0_19] : memref<4x16x32xbf16, #tpu.memory_space<vmem>>, vector<1x16x32xbf16>
    %28 = vector.shape_cast %27 : vector<1x16x32xbf16> to vector<16x32xbf16>
    %cst_20 = arith.constant dense<0.000000e+00> : vector<64x32xf32>
    %29 = tpu.matmul %26, %28, %cst_20 {dimension_numbers = #tpu.dot_dimension_numbers<[1], [0], [0], [1], [0, 0, 1, 1], [], []>} : vector<64x16xbf16>, vector<16x32xbf16>, vector<64x32xf32> -> vector<64x32xf32>
    %30 = arith.addf %20, %29 : vector<64x32xf32>
    %c8_i32_21 = arith.constant 8 : i32
    %31 = arith.muli %arg1, %c8_i32_21 : i32
    %c1_i32_22 = arith.constant 1 : i32
    %32 = arith.addi %31, %c1_i32_22 : i32
    %c0_23 = arith.constant 0 : index
    %33 = arith.index_cast %32 : i32 to index
    %c1_24 = arith.constant 1 : index
    %c0_25 = arith.constant 0 : index
    %34 = vector.load %arg2[%c0_23, %33, %c1_24, %c0_25] : memref<1x9x9x16xbf16, #tpu.memory_space<vmem>>, vector<1x8x8x16xbf16>
    %35 = vector.shape_cast %34 : vector<1x8x8x16xbf16> to vector<8x8x16xbf16>
    %36 = vector.shape_cast %35 : vector<8x8x16xbf16> to vector<64x16xbf16>
    %c3 = arith.constant 3 : index
    %c0_26 = arith.constant 0 : index
    %c0_27 = arith.constant 0 : index
    %37 = vector.load %arg3[%c3, %c0_26, %c0_27] : memref<4x16x32xbf16, #tpu.memory_space<vmem>>, vector<1x16x32xbf16>
    %38 = vector.shape_cast %37 : vector<1x16x32xbf16> to vector<16x32xbf16>
    %cst_28 = arith.constant dense<0.000000e+00> : vector<64x32xf32>
    %39 = tpu.matmul %36, %38, %cst_28 {dimension_numbers = #tpu.dot_dimension_numbers<[1], [0], [0], [1], [0, 0, 1, 1], [], []>} : vector<64x16xbf16>, vector<16x32xbf16>, vector<64x32xf32> -> vector<64x32xf32>
    %40 = arith.addf %30, %39 : vector<64x32xf32>
    %c0_29 = arith.constant 0 : index
    %c0_30 = arith.constant 0 : index
    %41 = vector.load %arg4[%c0_29, %c0_30] : memref<3x32xf32, #tpu.memory_space<vmem>>, vector<1x32xf32>
    %c1_31 = arith.constant 1 : index
    %c0_32 = arith.constant 0 : index
    %42 = vector.load %arg4[%c1_31, %c0_32] : memref<3x32xf32, #tpu.memory_space<vmem>>, vector<1x32xf32>
    %c2_33 = arith.constant 2 : index
    %c0_34 = arith.constant 0 : index
    %43 = vector.load %arg4[%c2_33, %c0_34] : memref<3x32xf32, #tpu.memory_space<vmem>>, vector<1x32xf32>
    %44 = vector.broadcast %41 : vector<1x32xf32> to vector<64x32xf32>
    %45 = arith.addf %40, %44 : vector<64x32xf32>
    %cst_35 = arith.constant dense<0.000000e+00> : vector<64xf32>
    %46 = vector.multi_reduction <add>, %45, %cst_35 [1] : vector<64x32xf32> to vector<64xf32>
    %47 = vector.shape_cast %46 : vector<64xf32> to vector<64x1xf32>
    %cst_36 = arith.constant 3.200000e+01 : f32
    %48 = vector.broadcast %cst_36 : f32 to vector<64x1xf32>
    %49 = arith.divf %47, %48 : vector<64x1xf32>
    %50 = vector.broadcast %49 : vector<64x1xf32> to vector<64x32xf32>
    %51 = arith.subf %45, %50 : vector<64x32xf32>
    %52 = arith.mulf %51, %51 : vector<64x32xf32>
    %cst_37 = arith.constant dense<0.000000e+00> : vector<64xf32>
    %53 = vector.multi_reduction <add>, %52, %cst_37 [1] : vector<64x32xf32> to vector<64xf32>
    %54 = vector.shape_cast %53 : vector<64xf32> to vector<64x1xf32>
    %cst_38 = arith.constant 3.200000e+01 : f32
    %55 = vector.broadcast %cst_38 : f32 to vector<64x1xf32>
    %56 = arith.divf %54, %55 : vector<64x1xf32>
    %cst_39 = arith.constant 9.99999974E-6 : f32
    %57 = vector.broadcast %cst_39 : f32 to vector<64x1xf32>
    %58 = arith.addf %56, %57 : vector<64x1xf32>
    %59 = math.rsqrt %58 : vector<64x1xf32>
    %60 = vector.broadcast %59 : vector<64x1xf32> to vector<64x32xf32>
    %61 = arith.mulf %51, %60 : vector<64x32xf32>
    %62 = vector.broadcast %42 : vector<1x32xf32> to vector<64x32xf32>
    %63 = arith.mulf %61, %62 : vector<64x32xf32>
    %64 = vector.broadcast %43 : vector<1x32xf32> to vector<64x32xf32>
    %65 = arith.addf %63, %64 : vector<64x32xf32>
    %66 = arith.truncf %65 : vector<64x32xf32> to vector<64x32xbf16>
    %c0_40 = arith.constant 0 : index
    %c0_41 = arith.constant 0 : index
    %c0_42 = arith.constant 0 : index
    %67 = vector.load %arg5[%c0_40, %c0_41, %c0_42] : memref<1x64x32xbf16, #tpu.memory_space<vmem>>, vector<1x64x32xbf16>
    %68 = vector.shape_cast %67 : vector<1x64x32xbf16> to vector<64x32xbf16>
    %69 = vector.shape_cast %66 : vector<64x32xbf16> to vector<1x64x32xbf16>
    tpu.vector_store %arg5[%c0_40, %c0_41, %c0_42], %69 {strides = array<i32>} : memref<1x64x32xbf16, #tpu.memory_space<vmem>>, vector<1x64x32xbf16>,
    return
  }
  func.func @transform_0(%arg0: i32, %arg1: i32) -> (i32, i32, i32, i32) {
    %c0_i32 = arith.constant 0 : i32
    %c0_i32_0 = arith.constant 0 : i32
    %c0_i32_1 = arith.constant 0 : i32
    %c0_i32_2 = arith.constant 0 : i32
    return %arg0, %c0_i32, %c0_i32_0, %c0_i32_1 : i32, i32, i32, i32
  }
  func.func @transform_1(%arg0: i32, %arg1: i32) -> (i32, i32, i32) {
    %c0_i32 = arith.constant 0 : i32
    %c0_i32_0 = arith.constant 0 : i32
    %c0_i32_1 = arith.constant 0 : i32
    %c0_i32_2 = arith.constant 0 : i32
    return %c0_i32, %c0_i32_0, %c0_i32_1 : i32, i32, i32
  }
  func.func @transform_2(%arg0: i32, %arg1: i32) -> (i32, i32) {
    %c0_i32 = arith.constant 0 : i32
    %c0_i32_0 = arith.constant 0 : i32
    %c0_i32_1 = arith.constant 0 : i32
    return %c0_i32, %c0_i32_0 : i32, i32
  }
  func.func @transform_3(%arg0: i32, %arg1: i32) -> (i32, i32, i32) {
    %c0_i32 = arith.constant 0 : i32
    %c0_i32_0 = arith.constant 0 : i32
    return %arg0, %arg1, %c0_i32 : i32, i32, i32
  }
}

</mosaic_0001>

<bundles_post_ra>
// kernel: _forward_impl.1
= control target key start
LH: loop header
LB: loop body
LE: loop exit
PB: predicated region body
PF: predicated region fallthrough
CT: control target
= control target key end

     0   :  { %s1444_s12 = smov 0   ;;  %s1446_s13 = smov 0   ;;  %s1712_s0 = inlined_call_operand.vmem [shape: bf16[2,9,9,16], index: 0, kind: input, shape index: {}]   ;;  %s1713_s1 = inlined_call_operand.vmem [shape: bf16[4,16,32], index: 1, kind: input, shape index: {}]   ;;  %s1714_s2 = inlined_call_operand.vmem [shape: f32[3,32], index: 2, kind: input, shape index: {}]   ;;  %s1715_s3 = inlined_call_operand.vmem [shape: bf16[2,64,32], index: 3, kind: output, shape index: {}]  }
   0x1   :  { %s1448_s14 = smov 0  }
   0x2 LB: > { %s25_s15 = sadd.s32 1, %s1418_s13  ;;  %p1171_p0 = scmp.ge.s32.totalorder %s1422_s14, 1  ;;  %s1422_s14 = sphi %s1448_s14, %s13_s14   ;;  %s1418_s13 = sphi %s1446_s13, %s1719_s13   ;;  %s1414_s12 = sphi %s1444_s12, %s1718_s12  }
   0x3   : > { %p27_p1 = scmp.ge.s32.totalorder %s25_s15, 2  ;;  %p151_p2 = scmp.lt.s32.totalorder %s1422_s14, 3 }
   0x5   : > { %s1721_s15 = smov (%p27_p1, %s25_s15), 0  ;;  %p152_p3 = pnand %p1171_p0, %p151_p2 }
   0x6   : > { %v1372_v0 = vld [vmem:[%s1713_s1 + $0x10] sm:$0xff] (!%p152_p3)   ;;  %p179_p4 = scmp.lt.s32.totalorder (!%p152_p3), %s1414_s12, 1  ;;  %v1375_v1 = vld [vmem:[%s1713_s1 + $0x8] sm:$0xff] (!%p152_p3)   ;;  %v1473_v2 = vld [vmem:[%s1713_s1] sm:$0xff] (!%p152_p3)   ;;  %vm353_vm0 = vcmask (!%p152_p3), 130048   ;;  %vm909_vm4 = vcmask (!%p152_p3), 261120  }
   0x7   : > { %155 = sbr.rel (%p152_p3) target bundleno = 613 (0x265), region = 32  ;;  %1303 = vmatprep.subr.bf16.mxu0 (!%p152_p3), %v1372_v0  ;;  %1283 = vmatprep.subr.bf16.mxu1 (!%p152_p3), %v1375_v1  ;;  %v1379_v3 = vld [vmem:[%s1713_s1 + $0x18] sm:$0xff] (!%p152_p3)   ;;  %vm217_vm1 = vsmask.f32 (!%p152_p3), 3328  ;;  %vm218_vm2 = vsmask.f32 (!%p152_p3), 7440 }
   0x8   : > { %1304 = vmatpush3.bf16.msra.mxu0 (!%p152_p3), %v1372_v0  ;;  %1284 = vmatpush3.bf16.msra.mxu1 (!%p152_p3), %v1375_v1  ;;  %vm1516_vm3 = vmor (!%p152_p3), %vm217_vm1, %vm218_vm2  ;;  %v1241_v31 = vld [vmem:[%s1714_s2] ss:$0 sm:$0xff] (!%p152_p3)  ;;  %vm1071_vm5 = vcmask (!%p152_p3), 257024  }
   0x9   : > { %1293 = vmatprep.subr.bf16.mxu1 (!%p152_p3), %v1473_v2  ;;  %1313 = vmatprep.subr.bf16.mxu0 (!%p152_p3), %v1379_v3 }
   0xe   : > { %s1723_s12 = smov (!%p179_p4, %s1414_s12), 1 }
   0xf   : > { %s1347_s22 = smul.u32 72, %s1723_s12  ;;  %s1254_s7 = sshll.u32 %s1723_s12, 5 }
  0x10   : > { %s1679_s10 = scalar_lea.vmem %s1715_s3, %s1254_s7 }
  0x11   : > { %s1483_s27 = scalar_lea.vmem %s1712_s0, %s1347_s22 }
  0x12   : > { %v1373_v4 = vld [vmem:[%s1483_s27 + $0x8] ss:$8 sps:$4 sm:$0xff]   ;;  %v1374_v5 = vld [vmem:[%s1483_s27 + $0x18] ss:$8 sps:$4 sm:$0xff]   ;;  %v209_v9 = vld [vmem:[%s1483_s27 + $0x4] sm:$0x1] }
  0x13   : > { %1305 = vmatprep.mubr.msk.bf16.mxu0 %vm353_vm0, %v1373_v4  ;;  %v1376_v6 = vld [vmem:[%s1483_s27 + $0x28] ss:$8 sps:$4 sm:$0xff]   ;;  %v1491_v7 = vld [vmem:[%s1483_s27] sm:$0xf]  ;;  %v210_v10 = vld [vmem:[%s1483_s27 + $0xc] sm:$0x1] }
  0x14   : > { %1306 = vmatmul.mubr.msk.bf16.vlgmr.msra.gmra.mrb[0].mxu0 %vm353_vm0, %v1374_v5  ;;  %v1494_v8 = vld [vmem:[%s1483_s27 + $0x8] sm:$0xf]  ;;  %v221_v11 = vshrl.u32 %v1491_v7, 16  ;;  %v224_v12 = vshll.u32 %v1491_v7, 16  ;;  %v230_v13 = vshll.u32 %v209_v9, 16  ;;  %v244_v16 = vshll.u32 %v210_v10, 16 }
  0x15   : > { %1309 = vmatprep.mubr.msk.bf16.mxu0 %vm353_vm0, %v1376_v6  ;;  %v235_v14 = vshrl.u32 %v1494_v8, 16  ;;  %1314 = vmatpush3.bf16.msra.mxu0 %v1379_v3  ;;  %v238_v15 = vshll.u32 %v1494_v8, 16  ;;  %v1378_v21 = vld [vmem:[%s1483_s27 + $0x38] ss:$8 sps:$4 sm:$0xff]   ;;  %v1505_v24 = vld [vmem:[%s1483_s27 + $0x10] sm:$0xf] }
  0x16   : > { %v223_v17 = vrot.slane %v221_v11, 4  ;;  %v226_v18 = vrot.slane %v224_v12, 5  ;;  %v232_v19 = vrot.slane %v230_v13, 5  ;;  %v246_v23 = vrot.slane %v244_v16, 5  ;;  %v1508_v25 = vld [vmem:[%s1483_s27 + $0x18] sm:$0xf] }
  0x17   : > { %v237_v20 = vrot.slane %v235_v14, 4  ;;  %v240_v22 = vrot.slane %v238_v15, 5  ;;  %v211_v27 = vld [vmem:[%s1483_s27 + $0x14] sm:$0x1]  ;;  %v212_v28 = vld [vmem:[%s1483_s27 + $0x1c] sm:$0x1] }
  0x18   : > { %v227_v26 = vor.u32 %v226_v18, %v223_v17  ;;  %v249_v29 = vshrl.u32 %v1505_v24, 16  ;;  %v252_v30 = vshll.u32 %v1505_v24, 16  ;;  %v258_v33 = vshll.u32 %v211_v27, 16  ;;  %v1214_v36 = vld [vmem:[%s1483_s27 + $0x8] sm:$0xf] }
  0x19   : > { %v241_v32 = vor.u32 %v240_v22, %v237_v20  ;;  %v263_v34 = vshrl.u32 %v1508_v25, 16  ;;  %v266_v35 = vshll.u32 %v1508_v25, 16  ;;  %v272_v40 = vshll.u32 %v212_v28, 16  ;;  %v1215_v41 = vld [vmem:[%s1483_s27 + $0xc] sm:$0x1] }
  0x1a   : > { %v228_v37 = vrot.slane %v227_v26, 4  ;;  %v251_v38 = vrot.slane %v249_v29, 4  ;;  %v254_v39 = vrot.slane %v252_v30, 5  ;;  %v260_v43 = vrot.slane %v258_v33, 5  ;;  %v1216_v46 = vld [vmem:[%s1483_s27 + $0x10] sm:$0xf] }
  0x1b   : > { %v242_v42 = vrot.slane %v241_v32, 4  ;;  %v265_v44 = vrot.slane %v263_v34, 4  ;;  %v268_v45 = vrot.slane %v266_v35, 5  ;;  %v274_v49 = vrot.slane %v272_v40, 5  ;;  %v1217_v53 = vld [vmem:[%s1483_s27 + $0x14] sm:$0x1] }
  0x1c   : > { %1310 = vmatmul.mubr.msk.bf16.gmra.mrb[4].mxu0 %vm353_vm0, %v1378_v21  ;;  %v233_v47 = vsel %vm1516_vm3, %v228_v37, %v232_v19  ;;  %v255_v48 = vor.u32 %v254_v39, %v251_v38  ;;  %v677_v50 = vshrl.u32 %v1214_v36, 16  ;;  %v680_v54 = vshll.u32 %v1214_v36, 16  ;;  %v1532_v56 = vld [vmem:[%s1483_s27 + $0x20] sm:$0xf]  ;;  %v213_v1 = vld [vmem:[%s1483_s27 + $0x24] sm:$0x1] }
  0x1d   : > { %v247_v51 = vsel %vm1516_vm3, %v242_v42, %v246_v23  ;;  %v269_v52 = vor.u32 %v268_v45, %v265_v44  ;;  %v686_v55 = vshll.u32 %v1215_v41, 16  ;;  %v691_v60 = vshrl.u32 %v1216_v46, 16  ;;  %v1539_v6 = vld [vmem:[%s1483_s27 + $0x28] sm:$0xf]  ;;  %v214_v13 = vld [vmem:[%s1483_s27 + $0x2c] sm:$0x1] }
  0x1e   : > { %v1177_v57 = vcombine.low %v233_v47, %v247_v51  ;;  %v256_v58 = vrot.slane %v255_v48, 4  ;;  %v679_v59 = vrot.slane %v677_v50, 4  ;;  %v682_v62 = vrot.slane %v680_v54, 5  ;;  %v1218_v15 = vld [vmem:[%s1483_s27 + $0x18] sm:$0xf] }
  0x1f   : > { %v270_v61 = vrot.slane %v269_v52, 4  ;;  %v688_v63 = vrot.slane %v686_v55, 5  ;;  %v694_v0 = vshll.u32 %v1216_v46, 16  ;;  %v693_v4 = vrot.slane %v691_v60, 4  ;;  %v1219_v26 = vld [vmem:[%s1483_s27 + $0x1c] sm:$0x1] }
  0x20   : > { %1285 = vmatprep.mubr.msk.bf16.mxu1 %vm353_vm0, %v1177_v57  ;;  %v261_v3 = vsel %vm1516_vm3, %v256_v58, %v260_v43  ;;  %v700_v5 = vshll.u32 %v1217_v53, 16  ;;  %v277_v9 = vshrl.u32 %v1532_v56, 16  ;;  %v683_v11 = vor.u32 %v682_v62, %v679_v59  ;;  %v1220_v30 = vld [vmem:[%s1483_s27 + $0x20] sm:$0xf]  ;;  %v1221_v39 = vld [vmem:[%s1483_s27 + $0x24] sm:$0x1] }
  0x21   : > { %v275_v10 = vsel %vm1516_vm3, %v270_v61, %v274_v49  ;;  %v696_v12 = vrot.slane %v694_v0, 5  ;;  %v280_v14 = vshll.u32 %v1532_v56, 16  ;;  %v286_v19 = vshll.u32 %v213_v1, 16  ;;  %v1562_v50 = vld [vmem:[%s1483_s27 + $0x38] sm:$0xf] }
  0x22   : > { %v1178_v16 = vcombine.low %v261_v3, %v275_v10  ;;  %v702_v17 = vrot.slane %v700_v5, 5  ;;  %v279_v18 = vrot.slane %v277_v9, 4  ;;  %v684_v20 = vrot.slane %v683_v11, 4  ;;  %v215_v51 = vld [vmem:[%s1483_s27 + $0x34] sm:$0x1] }
  0x23   : > { %v697_v21 = vor.u32 %v696_v12, %v693_v4  ;;  %v282_v22 = vrot.slane %v280_v14, 5  ;;  %v291_v23 = vshrl.u32 %v1539_v6, 16  ;;  %v288_v27 = vrot.slane %v286_v19, 5  ;;  %v216_v62 = vld [vmem:[%s1483_s27 + $0x3c] sm:$0x1] }
  0x24   : > { %1286 = vmatmul.mubr.msk.bf16.vlgmr.msra.gmra.mrb[0].mxu1 %vm353_vm0, %v1178_v16  ;;  %v294_v28 = vshll.u32 %v1539_v6, 16  ;;  %v300_v29 = vshll.u32 %v214_v13, 16  ;;  %v705_v32 = vshrl.u32 %v1218_v15, 16  ;;  %v689_v33 = vsel %vm1516_vm3, %v684_v20, %v688_v63  ;;  %v1222_v10 = vld [vmem:[%s1483_s27 + $0x28] sm:$0xf] }
  0x25   : > { %1294 = vmatpush3.bf16.msra.mxu1 %v1473_v2  ;;  %v698_v34 = vrot.slane %v697_v21, 4  ;;  %v283_v35 = vor.u32 %v282_v22, %v279_v18  ;;  %v293_v36 = vrot.slane %v291_v23, 4  ;;  %v708_v41 = vshll.u32 %v1218_v15, 16  ;;  %v1559_v2 = vld [vmem:[%s1483_s27 + $0x30] sm:$0xf] }
  0x26   : > { %v296_v37 = vrot.slane %v294_v28, 5  ;;  %v302_v38 = vrot.slane %v300_v29, 5  ;;  %v707_v40 = vrot.slane %v705_v32, 4  ;;  %v714_v44 = vshll.u32 %v1219_v26, 16  ;;  %v1223_v11 = vld [vmem:[%s1483_s27 + $0x2c] sm:$0x1] }
  0x27   : > { %v703_v42 = vsel %vm1516_vm3, %v698_v34, %v702_v17  ;;  %v284_v43 = vrot.slane %v283_v35, 4  ;;  %v719_v45 = vshrl.u32 %v1220_v30, 16  ;;  %v710_v48 = vrot.slane %v708_v41, 5  ;;  %v1224_v15 = vld [vmem:[%s1483_s27 + $0x30] sm:$0xf] }
  0x28   : > { %v1232_v46 = vcombine.low %v689_v33, %v703_v42  ;;  %v297_v47 = vor.u32 %v296_v37, %v293_v36  ;;  %v722_v49 = vshll.u32 %v1220_v30, 16  ;;  %v716_v53 = vrot.slane %v714_v44, 5  ;;  %v1225_v22 = vld [vmem:[%s1483_s27 + $0x34] sm:$0x1]  ;;  %v1226_v30 = vld [vmem:[%s1483_s27 + $0x38] sm:$0xf] }
  0x29   : > { %v289_v52 = vsel %vm1516_vm3, %v284_v43, %v288_v27  ;;  %v721_v54 = vrot.slane %v719_v45, 4  ;;  %v728_v55 = vshll.u32 %v1221_v39, 16  ;;  %v711_v58 = vor.u32 %v710_v48, %v707_v40  ;;  %v1227_v36 = vld [vmem:[%s1483_s27 + $0x3c] sm:$0x1]  ;;  %v1228_v41 = vld [vmem:[%s1483_s27 + $0x40] sm:$0xf] }
  0x2a   : > { %1315 = vmatprep.mubr.msk.bf16.mxu0 %vm353_vm0, %v1232_v46  ;;  %v298_v57 = vrot.slane %v297_v47, 4  ;;  %v724_v59 = vrot.slane %v722_v49, 5  ;;  %v305_v60 = vshrl.u32 %v1559_v2, 16  ;;  %v308_v63 = vshll.u32 %v1559_v2, 16 }
  0x2b   : > { %v730_v61 = vrot.slane %v728_v55, 5  ;;  %v314_v0 = vshll.u32 %v215_v51, 16  ;;  %v319_v1 = vshrl.u32 %v1562_v50, 16  ;;  %v712_v4 = vrot.slane %v711_v58, 4 }
  0x2c   : > { %v303_v3 = vsel %vm1516_vm3, %v298_v57, %v302_v38  ;;  %v725_v5 = vor.u32 %v724_v59, %v721_v54  ;;  %v307_v9 = vrot.slane %v305_v60, 4  ;;  %v310_v13 = vrot.slane %v308_v63, 5 }
  0x2d   : > { %v1179_v12 = vcombine.low %v289_v52, %v303_v3  ;;  %v321_v14 = vrot.slane %v319_v1, 4  ;;  %v1186_v16 = vcombine.low %v1491_v7, %v1494_v8  ;;  %v717_v17 = vsel %vm1516_vm3, %v712_v4, %v716_v53  ;;  %v1229_v52 = vld [vmem:[%s1483_s27 + $0x44] sm:$0x1] }
  0x2e   : > { %v726_v18 = vrot.slane %v725_v5, 4  ;;  %v322_v19 = vshll.u32 %v1562_v50, 16  ;;  %v328_v20 = vshll.u32 %v216_v62, 16  ;;  %v311_v21 = vor.u32 %v310_v13, %v307_v9 }
  0x2f   : > { %1289 = vmatprep.mubr.msk.bf16.mxu1 %vm353_vm0, %v1179_v12  ;;  %v733_v23 = vshrl.u32 %v1222_v10, 16  ;;  %v736_v26 = vshll.u32 %v1222_v10, 16  ;;  %v742_v27 = vshll.u32 %v1223_v11, 16  ;;  %v316_v7 = vrot.slane %v314_v0, 5 }
  0x30   : > { %v731_v28 = vsel %vm1516_vm3, %v726_v18, %v730_v61  ;;  %v324_v8 = vrot.slane %v322_v19, 5  ;;  %v747_v29 = vshrl.u32 %v1224_v15, 16  ;;  %v312_v33 = vrot.slane %v311_v21, 4 }
  0x31   : > { %v1233_v32 = vcombine.low %v717_v17, %v731_v28  ;;  %v735_v34 = vrot.slane %v733_v23, 4  ;;  %v738_v35 = vrot.slane %v736_v26, 5  ;;  %v330_v38 = vrot.slane %v328_v20, 5 }
  0x32   : > { %v325_v37 = vor.u32 %v324_v8, %v321_v14  ;;  %v749_v39 = vrot.slane %v747_v29, 4  ;;  %v750_v40 = vshll.u32 %v1224_v15, 16  ;;  %v744_v43 = vrot.slane %v742_v27, 5 }
  0x33   : > { %1316 = vmatmul.mubr.msk.bf16.vlgmr.msra.gmra.mrb[0].mxu0 %vm353_vm0, %v1233_v32  ;;  %v739_v42 = vor.u32 %v738_v35, %v735_v34  ;;  %v756_v44 = vshll.u32 %v1225_v22, 16  ;;  %v761_v45 = vshrl.u32 %v1226_v30, 16  ;;  %v317_v46 = vsel %vm1516_vm3, %v312_v33, %v316_v7 }
  0x34   : > { %v326_v47 = vrot.slane %v325_v37, 4  ;;  %v752_v48 = vrot.slane %v750_v40, 5  ;;  %v764_v49 = vshll.u32 %v1226_v30, 16  ;;  %v770_v54 = vshll.u32 %v1227_v36, 16 }
  0x35   : > { %v740_v51 = vrot.slane %v739_v42, 4  ;;  %v763_v53 = vrot.slane %v761_v45, 4  ;;  %v775_v55 = vshrl.u32 %v1228_v41, 16  ;;  %v758_v59 = vrot.slane %v756_v44, 5 }
  0x36   : > { %v331_v57 = vsel %vm1516_vm3, %v326_v47, %v330_v38  ;;  %v753_v58 = vor.u32 %v752_v48, %v749_v39  ;;  %v766_v60 = vrot.slane %v764_v49, 5  ;;  %v778_v63 = vshll.u32 %v1228_v41, 16 }
  0x37   : > { %v1180_v61 = vcombine.low %v317_v46, %v331_v57  ;;  %v777_v62 = vrot.slane %v775_v55, 4  ;;  %v745_v0 = vsel %vm1516_vm3, %v740_v51, %v744_v43  ;;  %v784_v4 = vshll.u32 %v1229_v52, 16 }
  0x38   : > { %v754_v1 = vrot.slane %v753_v58, 4  ;;  %v767_v3 = vor.u32 %v766_v60, %v763_v53  ;;  %v772_v5 = vrot.slane %v770_v54, 5  ;;  %v780_v9 = vrot.slane %v778_v63, 5 }
  0x39   : > { %1290 = vmatmul.mubr.msk.bf16.gmra.mrb[4].mxu1 %vm353_vm0, %v1180_v61  ;;  %v786_v14 = vrot.slane %v784_v4, 5  ;;  %v1187_v18 = vcombine.low %v1505_v24, %v1508_v25  ;;  %v1188_v19 = vcombine.low %v1532_v56, %v1539_v6  ;;  %v1189_v21 = vcombine.low %v1559_v2, %v1562_v50 }
  0x3a   : > { %v759_v10 = vsel %vm1516_vm3, %v754_v1, %v758_v59  ;;  %1295 = vmatprep.mubr.msk.bf16.mxu1 %vm353_vm0, %v1186_v16  ;;  %v768_v11 = vrot.slane %v767_v3, 4  ;;  %v781_v13 = vor.u32 %v780_v9, %v777_v62 }
  0x3b   : > { %v1234_v12 = vcombine.low %v745_v0, %v759_v10 }
  0x3c   : > { %v773_v15 = vsel %vm1516_vm3, %v768_v11, %v772_v5  ;;  %v782_v17 = vrot.slane %v781_v13, 4 }
  0x3d   : > { %1319 = vmatprep.mubr.msk.bf16.mxu0 %vm353_vm0, %v1234_v12 }
  0x3e   : > { %v787_v20 = vsel %vm1516_vm3, %v782_v17, %v786_v14 }
  0x3f   : > { %v1235_v16 = vcombine.low %v773_v15, %v787_v20 }
  0x41   : > { %1296 = vmatmul.mubr.msk.bf16.vlgmr.msra.gmra.mrb[0].mxu1 %vm353_vm0, %v1187_v18  ;;  %1320 = vmatmul.mubr.msk.bf16.gmra.mrb[4].mxu0 %vm353_vm0, %v1235_v16 }
  0x42   : > { %1299 = vmatprep.mubr.msk.bf16.mxu1 %vm353_vm0, %v1188_v19 }
  0x49   : > { %1300 = vmatmul.mubr.msk.bf16.gmra.mrb[4].mxu1 %vm353_vm0, %v1189_v21 }
 0x106   : > { %v1317_v22 = vpop.f32.mrb[0].mxu0 }
 0x107   : > { %v855_v24 = vpop.f32.mrb[1].mxu0 }
 0x108   : > { %v1318_v25 = vpop.f32.mrb[2].mxu0 }
 0x109   : > { %v858_v23 = vpop.f32.mrb[3].mxu0 }
 0x114   : > { %v1297_v56 = vpop.f32.mrb[0].mxu1  ;;  %v1321_v6 = vpop.f32.mrb[4].mxu0 }
 0x115   : > { %v1323_v26 = vadd.f32 %v1317_v22, %v1297_v56  ;;  %v503_v27 = vpop.f32.mrb[1].mxu1  ;;  %v871_v28 = vpop.f32.mrb[5].mxu0 }
 0x116   : > { %v1324_v7 = vadd.f32 %v855_v24, %v503_v27  ;;  %v1298_v8 = vpop.f32.mrb[2].mxu1  ;;  %v1322_v29 = vpop.f32.mrb[6].mxu0 }
 0x117   : > { %v1325_v2 = vadd.f32 %v1318_v25, %v1298_v8  ;;  %v506_v50 = vpop.f32.mrb[3].mxu1  ;;  %v903_v30 = vadd.f32 %v1323_v26, %v1241_v31  ;;  %v874_v32 = vpop.f32.mrb[7].mxu0 }
 0x118   : > { %v1326_v33 = vadd.f32 %v858_v23, %v506_v50  ;;  %v901_v34 = vadd.f32 %v1324_v7, %v1241_v31 }
 0x119   : > { %v916_v35 = vsel %vm909_vm4, %v903_v30, 0.0  ;;  %v904_v36 = vadd.f32 %v1325_v2, %v1241_v31 }
 0x11a   : > { %917 = vadd.xlane.f32.xlu1 %v916_v35  ;;  %v910_v37 = vsel %vm909_vm4, %v901_v34, 0.0  ;;  %v902_v38 = vadd.f32 %v1326_v33, %v1241_v31 }
 0x11b   : > { %911 = vadd.xlane.f32.xlu0 %v910_v37  ;;  %v919_v42 = vsel %vm909_vm4, %v904_v36, 0.0 }
 0x11c   : > { %v1301_v39 = vpop.f32.mrb[4].mxu1  ;;  %v913_v45 = vsel %vm909_vm4, %v902_v38, 0.0 }
 0x11d   : > { %v1327_v40 = vadd.f32 %v1321_v6, %v1301_v39  ;;  %v519_v41 = vpop.f32.mrb[5].mxu1 }
 0x11e   : > { %v1328_v43 = vadd.f32 %v871_v28, %v519_v41  ;;  %920 = vadd.xlane.f32.xlu1 %v919_v42  ;;  %v1302_v44 = vpop.f32.mrb[6].mxu1 }
 0x11f   : > { %v1329_v46 = vadd.f32 %v1322_v29, %v1302_v44  ;;  %914 = vadd.xlane.f32.xlu0 %v913_v45  ;;  %v522_v47 = vpop.f32.mrb[7].mxu1  ;;  %v907_v53 = vadd.f32 %v1327_v40, %v1241_v31 }
 0x120   : > { %v1330_v48 = vadd.f32 %v874_v32, %v522_v47  ;;  %v905_v49 = vadd.f32 %v1328_v43, %v1241_v31 }
 0x121   : > { %v908_v55 = vadd.f32 %v1329_v46, %v1241_v31  ;;  %v928_v57 = vsel %vm909_vm4, %v907_v53, 0.0 }
 0x122   : > { %v922_v51 = vsel %vm909_vm4, %v905_v49, 0.0  ;;  %v906_v52 = vadd.f32 %v1330_v48, %v1241_v31 }
 0x123   : > { %923 = vadd.xlane.f32.xlu0 %v922_v51  ;;  %v931_v58 = vsel %vm909_vm4, %v908_v55, 0.0 }
 0x124   : > { %v925_v54 = vsel %vm909_vm4, %v906_v52, 0.0 }
 0x125   : > { %926 = vadd.xlane.f32.xlu1 %v925_v54  ;;  %v1242_v54 = vld [vmem:[%s1714_s2 + $0x1] ss:$0 sm:$0xff] }
 0x127   : > { %929 = vadd.xlane.f32.xlu0 %v928_v57 }
 0x129   : > { %932 = vadd.xlane.f32.xlu1 %v931_v58 }
 0x1a7   : > { %v918_v59 = vpop.xlane.xlu1 %917 }
 0x1a8   : > { %v937_v60 = vmul.f32 0.03125, %v918_v59  ;;  %v912_v61 = vpop.xlane.xlu0 %911 }
 0x1a9   : > { %v935_v62 = vmul.f32 0.03125, %v912_v61 }
 0x1aa   : > { %v1627_v63 = vsub.f32 %v903_v30, %v937_v60  ;;  %v1243_v60 = vld [vmem:[%s1714_s2 + $0x2] ss:$0 sm:$0xff] }
 0x1ab   : > { %v1629_v0 = vsub.f32 %v901_v34, %v935_v62  ;;  %v921_v1 = vpop.xlane.xlu1 %920 }
 0x1ac   : > { %v938_v3 = vmul.f32 0.03125, %v921_v1  ;;  %v915_v4 = vpop.xlane.xlu0 %914  ;;  %v953_v5 = vmul.f32 %v1627_v63, %v1627_v63 }
 0x1ad   : > { %v936_v9 = vmul.f32 0.03125, %v915_v4  ;;  %v951_v12 = vmul.f32 %v1629_v0, %v1629_v0 }
 0x1ae   : > { %v1633_v10 = vsub.f32 %v904_v36, %v938_v3  ;;  %v965_v11 = vsel %vm909_vm4, %v953_v5, 0.0 }
 0x1af   : > { %v1638_v13 = vsub.f32 %v902_v38, %v936_v9  ;;  %966 = vadd.xlane.f32.xlu0 %v965_v11  ;;  %v959_v19 = vsel %vm909_vm4, %v951_v12, 0.0 }
 0x1b0   : > { %v924_v14 = vpop.xlane.xlu0 %923  ;;  %v954_v15 = vmul.f32 %v1633_v10, %v1633_v10 }
 0x1b1   : > { %v939_v17 = vmul.f32 0.03125, %v924_v14  ;;  %v952_v16 = vmul.f32 %v1638_v13, %v1638_v13 }
 0x1b2   : > { %v927_v18 = vpop.xlane.xlu1 %926  ;;  %v968_v20 = vsel %vm909_vm4, %v954_v15, 0.0 }
 0x1b3   : > { %v1646_v21 = vsub.f32 %v905_v49, %v939_v17  ;;  %v940_v22 = vmul.f32 0.03125, %v927_v18  ;;  %960 = vadd.xlane.f32.xlu0 %v959_v19  ;;  %969 = vadd.xlane.f32.xlu1 %v968_v20  ;;  %v962_v6 = vsel %vm909_vm4, %v952_v16, 0.0 }
 0x1b4   : > { %v930_v24 = vpop.xlane.xlu0 %929 }
 0x1b5   : > { %v1648_v25 = vsub.f32 %v906_v52, %v940_v22  ;;  %v941_v23 = vmul.f32 0.03125, %v930_v24  ;;  %v955_v56 = vmul.f32 %v1646_v21, %v1646_v21 }
 0x1b6   : > { %v933_v31 = vpop.xlane.xlu1 %932 }
 0x1b7   : > { %v1653_v26 = vsub.f32 %v907_v53, %v941_v23  ;;  %v942_v27 = vmul.f32 0.03125, %v933_v31  ;;  %963 = vadd.xlane.f32.xlu1 %v962_v6  ;;  %v971_v28 = vsel %vm909_vm4, %v955_v56, 0.0  ;;  %v956_v7 = vmul.f32 %v1648_v25, %v1648_v25 }
 0x1b8   : > { %972 = vadd.xlane.f32.xlu0 %v971_v28 }
 0x1b9   : > { %v1658_v8 = vsub.f32 %v908_v55, %v942_v27  ;;  %v974_v29 = vsel %vm909_vm4, %v956_v7, 0.0  ;;  %v957_v2 = vmul.f32 %v1653_v26, %v1653_v26 }
 0x1bb   : > { %975 = vadd.xlane.f32.xlu1 %v974_v29  ;;  %v977_v50 = vsel %vm909_vm4, %v957_v2, 0.0  ;;  %v958_v30 = vmul.f32 %v1658_v8, %v1658_v8 }
 0x1bc   : > { %978 = vadd.xlane.f32.xlu0 %v977_v50 }
 0x1bd   : > { %v980_v32 = vsel %vm909_vm4, %v958_v30, 0.0 }
 0x1bf   : > { %981 = vadd.xlane.f32.xlu1 %v980_v32 }
 0x23c   : > { %v967_v33 = vpop.xlane.xlu0 %966 }
 0x23d   : > { %v985_v34 = vmul.f32 0.03125, %v967_v33 }
 0x23f   : > { %v993_v35 = vadd.f32 1e-05, %v985_v34 }
 0x240   : > { %v961_v36 = vpop.xlane.xlu0 %960  ;;  %v970_v37 = vpop.xlane.xlu1 %969 }
 0x241   : > { %1384 = vrsqrt.f32 %v993_v35  ;;  %v983_v38 = vmul.f32 0.03125, %v961_v36  ;;  %v986_v39 = vmul.f32 0.03125, %v970_v37 }
 0x243   : > { %v991_v40 = vadd.f32 1e-05, %v983_v38  ;;  %v994_v41 = vadd.f32 1e-05, %v986_v39 }
 0x244   : > { %v964_v42 = vpop.xlane.xlu1 %963 }
 0x245   : > { %1386 = vrsqrt.f32 %v991_v40  ;;  %v984_v43 = vmul.f32 0.03125, %v964_v42  ;;  %v973_v44 = vpop.xlane.xlu0 %972 }
 0x246   : > { %1388 = vrsqrt.f32 %v994_v41  ;;  %v987_v45 = vmul.f32 0.03125, %v973_v44 }
 0x247   : > { %v992_v46 = vadd.f32 1e-05, %v984_v43 }
 0x248   : > { %v995_v47 = vadd.f32 1e-05, %v987_v45  ;;  %v976_v48 = vpop.xlane.xlu1 %975 }
 0x249   : > { %1390 = vrsqrt.f32 %v992_v46  ;;  %v988_v49 = vmul.f32 0.03125, %v976_v48  ;;  %v979_v51 = vpop.xlane.xlu0 %978 }
 0x24a   : > { %1392 = vrsqrt.f32 %v995_v47  ;;  %v989_v52 = vmul.f32 0.03125, %v979_v51 }
 0x24b   : > { %v1385_v53 = vpop.eup %1384  ;;  %v996_v55 = vadd.f32 1e-05, %v988_v49 }
 0x24c   : > { %v1009_v57 = vmul.f32 %v1385_v53, %v1627_v63  ;;  %v997_v58 = vadd.f32 1e-05, %v989_v52  ;;  %v982_v59 = vpop.xlane.xlu1 %981 }
 0x24d   : > { %1394 = vrsqrt.f32 %v996_v55  ;;  %v990_v61 = vmul.f32 0.03125, %v982_v59 }
 0x24e   : > { %v1021_v62 = vmul.f32 %v1242_v54, %v1009_v57  ;;  %1396 = vrsqrt.f32 %v997_v58 }
 0x24f   : > { %v1387_v1 = vpop.eup %1386  ;;  %v998_v3 = vadd.f32 1e-05, %v990_v61 }
 0x250   : > { %v1389_v4 = vpop.eup %1388  ;;  %v1033_v5 = vadd.f32 %v1243_v60, %v1021_v62  ;;  %v1007_v9 = vmul.f32 %v1387_v1, %v1629_v0 }
 0x251   : > { %v1010_v63 = vmul.f32 %v1389_v4, %v1633_v10  ;;  %1398 = vrsqrt.f32 %v998_v3 }
 0x252   : > { %v1257_v11 = vpack.c.bf16 %v1033_v5, %v1033_v5  ;;  %v1019_v12 = vmul.f32 %v1242_v54, %v1007_v9 }
 0x253   : > { %v1391_v14 = vpop.eup %1390  ;;  %v1022_v15 = vmul.f32 %v1242_v54, %v1010_v63 }
 0x254   : > { %v1393_v17 = vpop.eup %1392  ;;  %1074 = vst.msk [vmem:[%s1679_s10 + $0x8] sm:$0xf] %vm1071_vm5, %v1257_v11  ;;  %v1031_v0 = vadd.f32 %v1243_v60, %v1019_v12  ;;  %v1008_v18 = vmul.f32 %v1391_v14, %v1638_v13 }
 0x255   : > { %v1034_v19 = vadd.f32 %v1243_v60, %v1022_v15  ;;  %v1011_v20 = vmul.f32 %v1393_v17, %v1646_v21 }
 0x256   : > { %v1255_v16 = vpack.c.bf16 %v1031_v0, %v1031_v0  ;;  %v1020_v22 = vmul.f32 %v1242_v54, %v1008_v18 }
 0x257   : > { %v1395_v10 = vpop.eup %1394  ;;  %v1258_v24 = vpack.c.bf16 %v1034_v19, %v1034_v19  ;;  %v1023_v23 = vmul.f32 %v1242_v54, %v1011_v20 }
 0x258   : > { %v1397_v56 = vpop.eup %1396  ;;  %1072 = vst.msk [vmem:[%s1679_s10] sm:$0xf] %vm1071_vm5, %v1255_v16  ;;  %v1032_v31 = vadd.f32 %v1243_v60, %v1020_v22  ;;  %v1012_v6 = vmul.f32 %v1395_v10, %v1648_v25 }
 0x259   : > { %1075 = vst.msk [vmem:[%s1679_s10 + $0xc] sm:$0xf] %vm1071_vm5, %v1258_v24  ;;  %v1035_v13 = vadd.f32 %v1243_v60, %v1023_v23  ;;  %v1013_v27 = vmul.f32 %v1397_v56, %v1653_v26 }
 0x25a   : > { %v1256_v21 = vpack.c.bf16 %v1032_v31, %v1032_v31  ;;  %v1024_v28 = vmul.f32 %v1242_v54, %v1012_v6 }
 0x25b   : > { %v1399_v7 = vpop.eup %1398  ;;  %v1259_v29 = vpack.c.bf16 %v1035_v13, %v1035_v13  ;;  %v1025_v2 = vmul.f32 %v1242_v54, %v1013_v27 }
 0x25c   : > { %1073 = vst.msk [vmem:[%s1679_s10 + $0x4] sm:$0xf] %vm1071_vm5, %v1256_v21  ;;  %v1036_v50 = vadd.f32 %v1243_v60, %v1024_v28  ;;  %v1014_v30 = vmul.f32 %v1399_v7, %v1658_v8 }
 0x25d   : > { %1076 = vst.msk [vmem:[%s1679_s10 + $0x10] sm:$0xf] %vm1071_vm5, %v1259_v29  ;;  %v1037_v25 = vadd.f32 %v1243_v60, %v1025_v2 }
 0x25e   : > { %v1260_v32 = vpack.c.bf16 %v1036_v50, %v1036_v50  ;;  %v1026_v33 = vmul.f32 %v1242_v54, %v1014_v30 }
 0x25f   : > { %v1261_v34 = vpack.c.bf16 %v1037_v25, %v1037_v25 }
 0x260   : > { %1077 = vst.msk [vmem:[%s1679_s10 + $0x14] sm:$0xf] %vm1071_vm5, %v1260_v32  ;;  %v1038_v26 = vadd.f32 %v1243_v60, %v1026_v33 }
 0x261   : > { %1078 = vst.msk [vmem:[%s1679_s10 + $0x18] sm:$0xf] %vm1071_vm5, %v1261_v34 }
 0x262   : > { %v1262_v35 = vpack.c.bf16 %v1038_v26, %v1038_v26 }
 0x264   : > { %1079 = vst.msk [vmem:[%s1679_s10 + $0x1c] sm:$0xf] %vm1071_vm5, %v1262_v35 }
 0x265 PF: > { %s13_s14 = sadd.s32 1, %s1422_s14   ;;  %s1718_s12 = smov %s1418_s13 }
 0x266   : > { %p10_p5 = scmp.ge.s32.totalorder %s13_s14, 4   ;;  %s1719_s13 = smov %s1721_s15 }
 0x268   :  { %12 = sbr.rel (!%p10_p5) target bundleno = 2 (0x2), region = 67 }

</bundles_post_ra>
